<compile_context>
chip_gen: v7x
topology: tpu7x:2x2x1
jax: 0.10.0
libtpu: 0.0.40
codegen_flags: <defaults>
</compile_context>

<pallas_src>
import math

import jax
import jax.numpy as jnp
from jax.experimental import pallas as pl
from jax.experimental.pallas import tpu as pltpu


# ---------------------------------------------------------------------------
# Fused kernel: phase 0 = streamed global-avg-pool + SE MLP, phase 1 = rescale
# ---------------------------------------------------------------------------
def _make_se_kernel(n, c, hw, ts, out_dtype):
    inv_hw = 1.0 / float(hw)
    ragged = (hw % ts) != 0

    def kernel(x_ref, w1_ref, b1_ref, w2_ref, b2_ref, o_ref, acc_ref, mask_ref):
        phase = pl.program_id(0)          # 0: pool + MLP, 1: channel rescale
        s = pl.program_id(1)              # spatial tile index
        n_s = pl.num_programs(1)

        @pl.when(phase == 0)
        def _pool_phase():
            @pl.when(s == 0)
            def _init():
                acc_ref[...] = jnp.zeros_like(acc_ref)

            x = x_ref[...].astype(jnp.float32)                     # (n, c, ts)
            if ragged:
                # Mask out-of-range lanes of the padded last tile.
                lane = jax.lax.broadcasted_iota(jnp.int32, (n, c, ts), 2)
                x = jnp.where(lane < (hw - s * ts), x, 0.0)
            acc_ref[...] += jnp.sum(x, axis=2)                     # (n, c)

            @pl.when(s == n_s - 1)
            def _finalize():
                mean = acc_ref[...] * inv_hw                       # (n, c)
                h = jnp.dot(mean, w1_ref[...],
                            preferred_element_type=jnp.float32) + b1_ref[...]
                h = jnp.maximum(h, 0.0)                            # ReLU
                z = jnp.dot(h, w2_ref[...],
                            preferred_element_type=jnp.float32) + b2_ref[...]
                mask_ref[...] = 1.0 / (1.0 + jnp.exp(-z))          # sigmoid (EUP)

        @pl.when(phase == 1)
        def _scale_phase():
            o_ref[...] = (x_ref[...].astype(jnp.float32)
                          * mask_ref[...][:, :, None]).astype(out_dtype)

    return kernel


# ---------------------------------------------------------------------------
# Tiling / VMEM sizing helpers
# ---------------------------------------------------------------------------
def _vmem_limit_bytes():
    """Generation-aware scoped-VMEM limit (v5e/v6e: 128 MiB phys, v7x: 64 MiB)."""
    try:
        cap = int(pltpu.get_tpu_info().vmem_capacity_bytes)
    except Exception:
        cap = 64 << 20                     # conservative (v7x) fallback
    return min((cap * 3) // 4, 100 << 20)  # 48 MiB on v7x, 96-100 MiB on v5e/v6e


def _choose_spatial_tile(hw, n, c, dtype_bytes, budget_bytes):
    """Spatial (lane-axis) tile: multiple of 128 or the full H*W extent."""
    if n * c * hw * dtype_bytes <= budget_bytes or hw <= 128:
        return hw                           # whole slab in one resident block
    max_lanes = budget_bytes // max(1, n * c * dtype_bytes)
    ts_max = max(128, (max_lanes // 128) * 128)
    ts_max = min(ts_max, (hw // 128) * 128)
    ts = ts_max                             # prefer a tile that divides H*W
    while ts >= 128:
        if hw % ts == 0:
            return ts
        ts -= 128
    return ts_max                           # ragged last tile (masked in-kernel)


# ---------------------------------------------------------------------------
# Wrapper
# ---------------------------------------------------------------------------
def se_block(x, w1, b1, w2, b2, *, spatial_tile=None):
    """SEBlock forward.  x: (N, C, H, W).  w1: (hidden, C), b1: (hidden,),
    w2: (C, hidden), b2: (C,)  (PyTorch nn.Linear layout).  The channel-scale
    broadcast requires out_channels == in_channels (same as the PyTorch code)."""
    N, C, H, W = x.shape
    hidden = w1.shape[0]
    cout = w2.shape[0]
    assert cout == C, "SEBlock channel-scale broadcast requires out_channels == in_channels"
    HW = H * W

    vmem_limit = _vmem_limit_bytes()
    itemsize = jnp.dtype(x.dtype).itemsize
    if spatial_tile is None:
        # ~1/5 of the limit per tile: 2x double-buffered input + 2x output + slack.
        ts = _choose_spatial_tile(HW, N, C, itemsize, vmem_limit // 5)
    else:
        ts = int(spatial_tile)
        assert ts == HW or ts % 128 == 0, "spatial_tile must be a multiple of 128 or == H*W"
    n_tiles = pl.cdiv(HW, ts)
    # NOTE: assumes one (N, C, min(HW, ts)) tile fits VMEM; tiling over N/C for
    # extremely large N*C with tiny H*W is not implemented.

    x3 = x.reshape(N, C, HW)               # free reshape: no transpose, HW on lanes
    w1m = jnp.transpose(w1)                # (C, hidden)
    w2m = jnp.transpose(w2)                # (hidden, C)
    b1m = b1.reshape(1, hidden)
    b2m = b2.reshape(1, C)

    resident = lambda p, s: (0, 0)         # weights/biases stay in VMEM (no re-DMA)

    out3 = pl.pallas_call(
        _make_se_kernel(N, C, HW, ts, x.dtype),
        out_shape=jax.ShapeDtypeStruct((N, C, HW), x.dtype),
        grid_spec=pltpu.PrefetchScalarGridSpec(
            num_scalar_prefetch=0,
            grid=(2, n_tiles),                                    # (phase, spatial tile)
            in_specs=[
                pl.BlockSpec((N, C, ts), lambda p, s: (0, 0, s)),  # x tile (both phases)
                pl.BlockSpec((C, hidden), resident),               # W1^T
                pl.BlockSpec((1, hidden), resident),               # b1
                pl.BlockSpec((hidden, C), resident),               # W2^T
                pl.BlockSpec((1, C), resident),                    # b2
            ],
            # Pinned to block 0 during phase 0 (s*p == 0) -> no garbage write-backs;
            # phase 1 walks the output blocks once, lane-dense.
            out_specs=pl.BlockSpec((N, C, ts), lambda p, s: (0, 0, s * p)),
            scratch_shapes=[
                pltpu.VMEM((N, C), jnp.float32),                   # channel-sum accumulator
                pltpu.VMEM((N, C), jnp.float32),                   # sigmoid mask
            ],
        ),
        compiler_params=pltpu.CompilerParams(
            dimension_semantics=("arbitrary", "arbitrary"),
            vmem_limit_bytes=vmem_limit),
    )(x3, w1m, b1m, w2m, b2m)

    return out3.reshape(N, C, H, W)


# ---------------------------------------------------------------------------
# Pure-JAX reference (for correctness check)
# ---------------------------------------------------------------------------
def _ref_forward(x, w1, b1, w2, b2):
    x_avg = jnp.mean(x, axis=(2, 3))                        # (N, C)
    h = jnp.maximum(x_avg @ w1.T + b1, 0.0)
    mask = jax.nn.sigmoid(h @ w2.T + b2)
    return x * mask[:, :, None, None]


# ---------------------------------------------------------------------------
if __name__ == "__main__":
    key = jax.random.PRNGKey(0)
    N, C, H, W = 2, 128, 16, 16          # in_channels = 128, spatial 16x16 -> HW = 256
    ratio = 16
    hidden = C // ratio                  # = 8

    ks = jax.random.split(key, 5)
    x = jax.random.normal(ks[0], (N, C, H, W), jnp.float32)
    # PyTorch nn.Linear weights: (out_features, in_features)
    w1 = (1.0 / math.sqrt(C)) * jax.random.normal(ks[1], (hidden, C), jnp.float32)
    b1 = (1.0 / math.sqrt(C)) * jax.random.normal(ks[2], (hidden,), jnp.float32)
    w2 = (1.0 / math.sqrt(hidden)) * jax.random.normal(ks[3], (C, hidden), jnp.float32)
    b2 = (1.0 / math.sqrt(hidden)) * jax.random.normal(ks[4], (C,), jnp.float32)

    # Exercise both code paths:
    #  * spatial_tile=128 -> 2 spatial tiles: streamed reduction + fused rescale
    #  * default          -> single resident tile (1 read + 1 write of x)
    out_tiled = jax.block_until_ready(
        jax.jit(lambda *a: se_block(*a, spatial_tile=128))(x, w1, b1, w2, b2))
    out_auto = jax.block_until_ready(
        jax.jit(se_block)(x, w1, b1, w2, b2))

    ref = _ref_forward(x, w1, b1, w2, b2)
    assert out_tiled.shape == (N, C, H, W)
    assert jnp.allclose(out_tiled, ref, atol=1e-4, rtol=1e-4), \
        float(jnp.max(jnp.abs(out_tiled - ref)))
    assert jnp.allclose(out_auto, ref, atol=1e-4, rtol=1e-4), \
        float(jnp.max(jnp.abs(out_auto - ref)))

    print("KERNEL_OK")
</pallas_src>

<mosaic_0001>
module attributes {stable_mosaic.version = 11 : i64} {
  func.func @kernel(%arg0: i32, %arg1: i32, %arg2: memref<2x128x128xf32, #tpu.memory_space<vmem>>, %arg3: memref<128x8xf32, #tpu.memory_space<vmem>>, %arg4: memref<1x8xf32, #tpu.memory_space<vmem>>, %arg5: memref<8x128xf32, #tpu.memory_space<vmem>>, %arg6: memref<1x128xf32, #tpu.memory_space<vmem>>, %arg7: memref<2x128x128xf32, #tpu.memory_space<vmem>>, %arg8: memref<2x128xf32, #tpu.memory_space<vmem>>, %arg9: memref<2x128xf32, #tpu.memory_space<vmem>>) attributes {dimension_semantics = [#tpu.dimension_semantics<arbitrary>, #tpu.dimension_semantics<arbitrary>], iteration_bounds = array<i64: 2, 2>, scalar_prefetch = 0 : i64, scratch_operands = 2 : i64, tpu.core_type = #tpu.core_type<tc>, window_params = [{transform_indices = @transform_0, window_bounds = array<i64: 2, 128, 128>}, {pipeline_mode = #tpu.pipeline_mode<synchronous>, transform_indices = @transform_1, window_bounds = array<i64: 128, 8>}, {pipeline_mode = #tpu.pipeline_mode<synchronous>, transform_indices = @transform_2, window_bounds = array<i64: 1, 8>}, {pipeline_mode = #tpu.pipeline_mode<synchronous>, transform_indices = @transform_3, window_bounds = array<i64: 8, 128>}, {pipeline_mode = #tpu.pipeline_mode<synchronous>, transform_indices = @transform_4, window_bounds = array<i64: 1, 128>}, {transform_indices = @transform_5, window_bounds = array<i64: 2, 128, 128>}]} {
    %c0_i32 = arith.constant 0 : i32
    %0 = arith.cmpi eq, %arg0, %c0_i32 : i32
    %1 = arith.extui %0 : i1 to i32
    %c0_i32_0 = arith.constant 0 : i32
    %2 = arith.cmpi ne, %1, %c0_i32_0 : i32
    scf.if %2 {
      %c0_i32_2 = arith.constant 0 : i32
      %6 = arith.cmpi eq, %arg1, %c0_i32_2 : i32
      %7 = arith.extui %6 : i1 to i32
      %c0_i32_3 = arith.constant 0 : i32
      %8 = arith.cmpi ne, %7, %c0_i32_3 : i32
      scf.if %8 {
        %cst_12 = arith.constant 0.000000e+00 : f32
        %17 = vector.broadcast %cst_12 : f32 to vector<2x128xf32>
        %c0_13 = arith.constant 0 : index
        %c0_14 = arith.constant 0 : index
        %18 = vector.load %arg8[%c0_13, %c0_14] : memref<2x128xf32, #tpu.memory_space<vmem>>, vector<2x128xf32>
        tpu.vector_store %arg8[%c0_13, %c0_14], %17 {strides = array<i32>} : memref<2x128xf32, #tpu.memory_space<vmem>>, vector<2x128xf32>,
      } else {
      }
      %c0 = arith.constant 0 : index
      %c0_4 = arith.constant 0 : index
      %c0_5 = arith.constant 0 : index
      %9 = vector.load %arg2[%c0, %c0_4, %c0_5] : memref<2x128x128xf32, #tpu.memory_space<vmem>>, vector<2x128x128xf32>
      %c0_6 = arith.constant 0 : index
      %c0_7 = arith.constant 0 : index
      %10 = vector.load %arg8[%c0_6, %c0_7] : memref<2x128xf32, #tpu.memory_space<vmem>>, vector<2x128xf32>
      %cst = arith.constant dense<0.000000e+00> : vector<2x128xf32>
      %11 = vector.multi_reduction <add>, %9, %cst [2] : vector<2x128x128xf32> to vector<2x128xf32>
      %12 = arith.addf %10, %11 : vector<2x128xf32>
      %c0_8 = arith.constant 0 : index
      %c0_9 = arith.constant 0 : index
      %13 = vector.load %arg8[%c0_8, %c0_9] : memref<2x128xf32, #tpu.memory_space<vmem>>, vector<2x128xf32>
      tpu.vector_store %arg8[%c0_8, %c0_9], %12 {strides = array<i32>} : memref<2x128xf32, #tpu.memory_space<vmem>>, vector<2x128xf32>,
      %c1_i32_10 = arith.constant 1 : i32
      %14 = arith.cmpi eq, %arg1, %c1_i32_10 : i32
      %15 = arith.extui %14 : i1 to i32
      %c0_i32_11 = arith.constant 0 : i32
      %16 = arith.cmpi ne, %15, %c0_i32_11 : i32
      scf.if %16 {
        %c0_12 = arith.constant 0 : index
        %c0_13 = arith.constant 0 : index
        %17 = vector.load %arg8[%c0_12, %c0_13] : memref<2x128xf32, #tpu.memory_space<vmem>>, vector<2x128xf32>
        %cst_14 = arith.constant 3.906250e-03 : f32
        %18 = vector.broadcast %cst_14 : f32 to vector<2x128xf32>
        %19 = arith.mulf %17, %18 : vector<2x128xf32>
        %c0_15 = arith.constant 0 : index
        %c0_16 = arith.constant 0 : index
        %20 = vector.load %arg3[%c0_15, %c0_16] : memref<128x8xf32, #tpu.memory_space<vmem>>, vector<128x8xf32>
        %cst_17 = arith.constant dense<0.000000e+00> : vector<2x8xf32>
        %21 = tpu.matmul %19, %20, %cst_17 {dimension_numbers = #tpu.dot_dimension_numbers<[1], [0], [0], [1], [0, 0, 1, 1], [], []>} : vector<2x128xf32>, vector<128x8xf32>, vector<2x8xf32> -> vector<2x8xf32>
        %c0_18 = arith.constant 0 : index
        %c0_19 = arith.constant 0 : index
        %22 = vector.load %arg4[%c0_18, %c0_19] : memref<1x8xf32, #tpu.memory_space<vmem>>, vector<1x8xf32>
        %23 = vector.broadcast %22 : vector<1x8xf32> to vector<2x8xf32>
        %24 = arith.addf %21, %23 : vector<2x8xf32>
        %cst_20 = arith.constant 0.000000e+00 : f32
        %25 = vector.broadcast %cst_20 : f32 to vector<2x8xf32>
        %26 = arith.maximumf %24, %25 : vector<2x8xf32>
        %c0_21 = arith.constant 0 : index
        %c0_22 = arith.constant 0 : index
        %27 = vector.load %arg5[%c0_21, %c0_22] : memref<8x128xf32, #tpu.memory_space<vmem>>, vector<8x128xf32>
        %cst_23 = arith.constant dense<0.000000e+00> : vector<2x128xf32>
        %28 = tpu.matmul %26, %27, %cst_23 {dimension_numbers = #tpu.dot_dimension_numbers<[1], [0], [0], [1], [0, 0, 1, 1], [], []>} : vector<2x8xf32>, vector<8x128xf32>, vector<2x128xf32> -> vector<2x128xf32>
        %c0_24 = arith.constant 0 : index
        %c0_25 = arith.constant 0 : index
        %29 = vector.load %arg6[%c0_24, %c0_25] : memref<1x128xf32, #tpu.memory_space<vmem>>, vector<1x128xf32>
        %30 = vector.broadcast %29 : vector<1x128xf32> to vector<2x128xf32>
        %31 = arith.addf %28, %30 : vector<2x128xf32>
        %cst_26 = arith.constant 0.000000e+00 : f32
        %32 = vector.broadcast %cst_26 : f32 to vector<2x128xf32>
        %33 = arith.subf %32, %31 : vector<2x128xf32>
        %34 = math.exp %33 : vector<2x128xf32>
        %cst_27 = arith.constant 1.000000e+00 : f32
        %35 = vector.broadcast %cst_27 : f32 to vector<2x128xf32>
        %36 = arith.addf %35, %34 : vector<2x128xf32>
        %cst_28 = arith.constant 1.000000e+00 : f32
        %37 = vector.broadcast %cst_28 : f32 to vector<2x128xf32>
        %38 = arith.divf %37, %36 : vector<2x128xf32>
        %c0_29 = arith.constant 0 : index
        %c0_30 = arith.constant 0 : index
        %39 = vector.load %arg9[%c0_29, %c0_30] : memref<2x128xf32, #tpu.memory_space<vmem>>, vector<2x128xf32>
        tpu.vector_store %arg9[%c0_29, %c0_30], %38 {strides = array<i32>} : memref<2x128xf32, #tpu.memory_space<vmem>>, vector<2x128xf32>,
      } else {
      }
    } else {
    }
    %c1_i32 = arith.constant 1 : i32
    %3 = arith.cmpi eq, %arg0, %c1_i32 : i32
    %4 = arith.extui %3 : i1 to i32
    %c0_i32_1 = arith.constant 0 : i32
    %5 = arith.cmpi ne, %4, %c0_i32_1 : i32
    scf.if %5 {
      %c0 = arith.constant 0 : index
      %c0_2 = arith.constant 0 : index
      %c0_3 = arith.constant 0 : index
      %6 = vector.load %arg2[%c0, %c0_2, %c0_3] : memref<2x128x128xf32, #tpu.memory_space<vmem>>, vector<2x128x128xf32>
      %c0_4 = arith.constant 0 : index
      %c0_5 = arith.constant 0 : index
      %7 = vector.load %arg9[%c0_4, %c0_5] : memref<2x128xf32, #tpu.memory_space<vmem>>, vector<2x128xf32>
      %8 = vector.shape_cast %7 : vector<2x128xf32> to vector<2x128x1xf32>
      %9 = vector.broadcast %8 : vector<2x128x1xf32> to vector<2x128x128xf32>
      %10 = arith.mulf %6, %9 : vector<2x128x128xf32>
      %c0_6 = arith.constant 0 : index
      %c0_7 = arith.constant 0 : index
      %c0_8 = arith.constant 0 : index
      %11 = vector.load %arg7[%c0_6, %c0_7, %c0_8] : memref<2x128x128xf32, #tpu.memory_space<vmem>>, vector<2x128x128xf32>
      tpu.vector_store %arg7[%c0_6, %c0_7, %c0_8], %10 {strides = array<i32>} : memref<2x128x128xf32, #tpu.memory_space<vmem>>, vector<2x128x128xf32>,
    } else {
    }
    return
  }
  func.func @transform_0(%arg0: i32, %arg1: i32) -> (i32, i32, i32) {
    %c0_i32 = arith.constant 0 : i32
    %c0_i32_0 = arith.constant 0 : i32
    %c0_i32_1 = arith.constant 0 : i32
    return %c0_i32, %c0_i32_0, %arg1 : i32, i32, i32
  }
  func.func @transform_1(%arg0: i32, %arg1: i32) -> (i32, i32) {
    %c0_i32 = arith.constant 0 : i32
    %c0_i32_0 = arith.constant 0 : i32
    %c0_i32_1 = arith.constant 0 : i32
    return %c0_i32, %c0_i32_0 : i32, i32
  }
  func.func @transform_2(%arg0: i32, %arg1: i32) -> (i32, i32) {
    %c0_i32 = arith.constant 0 : i32
    %c0_i32_0 = arith.constant 0 : i32
    %c0_i32_1 = arith.constant 0 : i32
    return %c0_i32, %c0_i32_0 : i32, i32
  }
  func.func @transform_3(%arg0: i32, %arg1: i32) -> (i32, i32) {
    %c0_i32 = arith.constant 0 : i32
    %c0_i32_0 = arith.constant 0 : i32
    %c0_i32_1 = arith.constant 0 : i32
    return %c0_i32, %c0_i32_0 : i32, i32
  }
  func.func @transform_4(%arg0: i32, %arg1: i32) -> (i32, i32) {
    %c0_i32 = arith.constant 0 : i32
    %c0_i32_0 = arith.constant 0 : i32
    %c0_i32_1 = arith.constant 0 : i32
    return %c0_i32, %c0_i32_0 : i32, i32
  }
  func.func @transform_5(%arg0: i32, %arg1: i32) -> (i32, i32, i32) {
    %0 = arith.muli %arg1, %arg0 : i32
    %c0_i32 = arith.constant 0 : i32
    %c0_i32_0 = arith.constant 0 : i32
    %c0_i32_1 = arith.constant 0 : i32
    return %c0_i32, %c0_i32_0, %0 : i32, i32, i32
  }
}

</mosaic_0001>

<bundles_post_ra>
// kernel: _lambda_.1
= control target key start
LH: loop header
LB: loop body
LE: loop exit
PB: predicated region body
PF: predicated region fallthrough
CT: control target
= control target key end

     0   :  { %s1672_s18 = smov 0   ;;  %s1674_s19 = smov 0   ;;  %s2223_s0 = inlined_call_operand.vmem [shape: f32[2,128,256], index: 0, kind: input, shape index: {}]   ;;  %s2224_s1 = inlined_call_operand.vmem [shape: f32[128,8], index: 1, kind: input, shape index: {}]   ;;  %s2225_s2 = inlined_call_operand.vmem [shape: f32[1,8], index: 2, kind: input, shape index: {}]   ;;  %s2226_s3 = inlined_call_operand.vmem [shape: f32[8,128], index: 3, kind: input, shape index: {}]   ;;  %s2227_s4 = inlined_call_operand.vmem [shape: f32[1,128], index: 4, kind: input, shape index: {}]   ;;  %s2228_s5 = inlined_call_operand.vmem [shape: f32[2,128,256], index: 5, kind: output, shape index: {}]  }
   0x1   :  { %s1676_s20 = smov 0   ;;  %s1678_s21 = smov 0  }
   0x2   :  { %s1680_s22 = smov 0   ;;  %s1682_s23 = smov 0  }
   0x3   :  { %s1684_s24 = smov 0   ;;  %s1686_s25 = smov 0  }
   0x4   :  { %s1688_s26 = smov 0  }
   0x5 LB: > { %s1383_s27 = sadd.s32 4294967295, %s1636_s26   ;;  %s24_s28 = sadd.s32 1, %s1628_s24  ;;  %s1636_s26 = sphi %s1688_s26, %s15_s26   ;;  %s1632_s25 = sphi %s1686_s25, %s2238_s25   ;;  %s1628_s24 = sphi %s1684_s24, %s2237_s24   ;;  %s1624_s23 = sphi %s1682_s23, %s2236_s23   ;;  %s1620_s22 = sphi %s1680_s22, %s2235_s22   ;;  %s1616_s21 = sphi %s1678_s21, %s2234_s21   ;;  %s1612_s20 = sphi %s1676_s20, %s2233_s20   ;;  %s1608_s19 = sphi %s1674_s19, %s2232_s19   ;;  %s1604_s18 = sphi %s1672_s18, %s2231_s18  }
   0x6   : > { %p25_p0 = scmp.ge.s32.totalorder %s24_s28, 2  ;;  %s27_s29 = sadd.s32 1, %s1632_s25 }
   0x7   : > { %s34_s30 = sadd.s32 1, %s1616_s21  ;;  %p41_p1 = scmp.ne.s32.totalorder %s1616_s21, %s1612_s20 }
   0x8   : > { %s2240_s28 = smov (%p25_p0, %s24_s28), 0  ;;  %s2242_s29 = smov (!%p25_p0, %s27_s29), %s1632_s25 }
   0x9   : > { %s31_s6 = ssub.s32 %s1628_s24, %s2240_s28  ;;  %p42_p2 = scmp.eq.s32.totalorder %s1636_s26, 0 }
   0xa   : > { %p29_p3 = scmp.ge.s32.totalorder %s2242_s29, 2  ;;  %p32_p4 = scmp.eq.s32.totalorder %s31_s6, 0 }
   0xb   : > { %p1729_p5 = por %p42_p2, %p41_p1  ;;  %s141_s8 = smul.u32 %s1628_s24, %s1632_s25 }
   0xc   : > { %s2244_s29 = smov (%p29_p3, %s2242_s29), 0  ;;  %p156_p6 = scmp.ne.s32.totalorder %s1608_s19, %s1604_s18 }
   0xd   : > { %s1738_s9 = scalar_select %p32_p4, %s1616_s21, %s34_s30  }
   0xe   : > { %s142_s10 = smul.u32 %s2244_s29, %s2240_s28  ;;  %p157_p7 = scmp.eq.s32.totalorder %s1383_s27, 3 }
   0xf   : > { %s146_s12 = sadd.s32 1, %s1608_s19  ;;  %p1386_p10 = scmp.ge.s32.totalorder %s1636_s26, 4 }
  0x10   : > { %s143_s11 = ssub.s32 %s141_s8, %s142_s10  ;;  %p1745_p9 = por %p157_p7, %p156_p6 }
  0x11   : > { %p144_p8 = scmp.eq.s32.totalorder %s143_s11, 0  ;;  %191 = sbr.rel (%p1386_p10) target bundleno = 44 (0x2c), region = 32 }
  0x13   : > { %s1750_s14 = scalar_select %p144_p8, %s1608_s19, %s146_s12  }
  0x18   : > { %194 = sbr.rel (!%p1729_p5) target bundleno = 44 (0x2c), region = 36  ;;  %s196_s15 = sand.u32 (%p1729_p5), 1, %s1616_s21  }
  0x19   : > { %s1388_s16 = sshll.u32 (%p1729_p5), %s1628_s24, 3  ;;  %s1387_s17 = sshll.u32 (%p1729_p5), %s196_s15, 8 }
  0x1a   : > { %s1760_s6 = scalar_lea.vmem (%p1729_p5), %s2223_s0, %s1388_s16  ;;  %s1765_s7 = scalar_lea.vmem (%p1729_p5), [#allocation4], %s1387_s17 }
  0x1b   : > { %v290_v0 = vld [vmem:[%s1760_s6] sm:$0xff] (%p1729_p5)  ;;  %v292_v1 = vld [vmem:[%s1760_s6 + $0x10] sm:$0xff] (%p1729_p5) }
  0x1c   : > { %v294_v2 = vld [vmem:[%s1760_s6 + $0x20] sm:$0xff] (%p1729_p5)  ;;  %291 = vst [vmem:[%s1765_s7] sm:$0xff] (%p1729_p5), %v290_v0  ;;  %293 = vst [vmem:[%s1765_s7 + $0x8] sm:$0xff] (%p1729_p5), %v292_v1  ;;  %v296_v3 = vld [vmem:[%s1760_s6 + $0x30] sm:$0xff] (%p1729_p5) }
  0x1d   : > { %295 = vst [vmem:[%s1765_s7 + $0x10] sm:$0xff] (%p1729_p5), %v294_v2  ;;  %v298_v4 = vld [vmem:[%s1760_s6 + $0x40] sm:$0xff] (%p1729_p5)  ;;  %v300_v5 = vld [vmem:[%s1760_s6 + $0x50] sm:$0xff] (%p1729_p5)  ;;  %297 = vst [vmem:[%s1765_s7 + $0x18] sm:$0xff] (%p1729_p5), %v296_v3 }
  0x1e   : > { %299 = vst [vmem:[%s1765_s7 + $0x20] sm:$0xff] (%p1729_p5), %v298_v4  ;;  %301 = vst [vmem:[%s1765_s7 + $0x28] sm:$0xff] (%p1729_p5), %v300_v5  ;;  %v302_v6 = vld [vmem:[%s1760_s6 + $0x60] sm:$0xff] (%p1729_p5)  ;;  %v304_v7 = vld [vmem:[%s1760_s6 + $0x70] sm:$0xff] (%p1729_p5) }
  0x1f   : > { %v306_v8 = vld [vmem:[%s1760_s6 + $0x80] sm:$0xff]  ;;  %303 = vst [vmem:[%s1765_s7 + $0x30] sm:$0xff] %v302_v6  ;;  %305 = vst [vmem:[%s1765_s7 + $0x38] sm:$0xff] %v304_v7  ;;  %v308_v9 = vld [vmem:[%s1760_s6 + $0x90] sm:$0xff] }
  0x20   : > { %307 = vst [vmem:[%s1765_s7 + $0x40] sm:$0xff] %v306_v8  ;;  %v310_v10 = vld [vmem:[%s1760_s6 + $0xa0] sm:$0xff]  ;;  %v312_v11 = vld [vmem:[%s1760_s6 + $0xb0] sm:$0xff]  ;;  %309 = vst [vmem:[%s1765_s7 + $0x48] sm:$0xff] %v308_v9 }
  0x21   : > { %311 = vst [vmem:[%s1765_s7 + $0x50] sm:$0xff] %v310_v10  ;;  %313 = vst [vmem:[%s1765_s7 + $0x58] sm:$0xff] %v312_v11  ;;  %v314_v12 = vld [vmem:[%s1760_s6 + $0xc0] sm:$0xff]  ;;  %v316_v13 = vld [vmem:[%s1760_s6 + $0xd0] sm:$0xff] }
  0x22   : > { %v318_v14 = vld [vmem:[%s1760_s6 + $0xe0] sm:$0xff]  ;;  %315 = vst [vmem:[%s1765_s7 + $0x60] sm:$0xff] %v314_v12  ;;  %317 = vst [vmem:[%s1765_s7 + $0x68] sm:$0xff] %v316_v13  ;;  %v320_v15 = vld [vmem:[%s1760_s6 + $0xf0] sm:$0xff] }
  0x23   : > { %319 = vst [vmem:[%s1765_s7 + $0x70] sm:$0xff] %v318_v14  ;;  %v322_v16 = vld [vmem:[%s1760_s6 + $0x100] sm:$0xff]  ;;  %v324_v17 = vld [vmem:[%s1760_s6 + $0x110] sm:$0xff]  ;;  %321 = vst [vmem:[%s1765_s7 + $0x78] sm:$0xff] %v320_v15 }
  0x24   : > { %323 = vst [vmem:[%s1765_s7 + $0x80] sm:$0xff] %v322_v16  ;;  %325 = vst [vmem:[%s1765_s7 + $0x88] sm:$0xff] %v324_v17  ;;  %v326_v18 = vld [vmem:[%s1760_s6 + $0x120] sm:$0xff]  ;;  %v328_v19 = vld [vmem:[%s1760_s6 + $0x130] sm:$0xff] }
  0x25   : > { %v330_v20 = vld [vmem:[%s1760_s6 + $0x140] sm:$0xff]  ;;  %327 = vst [vmem:[%s1765_s7 + $0x90] sm:$0xff] %v326_v18  ;;  %329 = vst [vmem:[%s1765_s7 + $0x98] sm:$0xff] %v328_v19  ;;  %v332_v21 = vld [vmem:[%s1760_s6 + $0x150] sm:$0xff] }
  0x26   : > { %331 = vst [vmem:[%s1765_s7 + $0xa0] sm:$0xff] %v330_v20  ;;  %v334_v22 = vld [vmem:[%s1760_s6 + $0x160] sm:$0xff]  ;;  %v336_v23 = vld [vmem:[%s1760_s6 + $0x170] sm:$0xff]  ;;  %333 = vst [vmem:[%s1765_s7 + $0xa8] sm:$0xff] %v332_v21 }
  0x27   : > { %335 = vst [vmem:[%s1765_s7 + $0xb0] sm:$0xff] %v334_v22  ;;  %337 = vst [vmem:[%s1765_s7 + $0xb8] sm:$0xff] %v336_v23  ;;  %v338_v24 = vld [vmem:[%s1760_s6 + $0x180] sm:$0xff]  ;;  %v340_v25 = vld [vmem:[%s1760_s6 + $0x190] sm:$0xff] }
  0x28   : > { %v342_v26 = vld [vmem:[%s1760_s6 + $0x1a0] sm:$0xff]  ;;  %339 = vst [vmem:[%s1765_s7 + $0xc0] sm:$0xff] %v338_v24  ;;  %341 = vst [vmem:[%s1765_s7 + $0xc8] sm:$0xff] %v340_v25  ;;  %v344_v27 = vld [vmem:[%s1760_s6 + $0x1b0] sm:$0xff] }
  0x29   : > { %343 = vst [vmem:[%s1765_s7 + $0xd0] sm:$0xff] %v342_v26  ;;  %v346_v28 = vld [vmem:[%s1760_s6 + $0x1c0] sm:$0xff]  ;;  %v348_v29 = vld [vmem:[%s1760_s6 + $0x1d0] sm:$0xff]  ;;  %345 = vst [vmem:[%s1765_s7 + $0xd8] sm:$0xff] %v344_v27 }
  0x2a   : > { %347 = vst [vmem:[%s1765_s7 + $0xe0] sm:$0xff] %v346_v28  ;;  %349 = vst [vmem:[%s1765_s7 + $0xe8] sm:$0xff] %v348_v29  ;;  %v350_v30 = vld [vmem:[%s1760_s6 + $0x1e0] sm:$0xff]  ;;  %v352_v31 = vld [vmem:[%s1760_s6 + $0x1f0] sm:$0xff] }
  0x2b   : > { %351 = vst [vmem:[%s1765_s7 + $0xf0] sm:$0xff] %v350_v30  ;;  %353 = vst [vmem:[%s1765_s7 + $0xf8] sm:$0xff] %v352_v31 }
  0x2c PF: > { %p1389_p11 = scmp.ge.s32.totalorder %s1636_s26, 1  ;;  %p358_p12 = scmp.lt.s32.totalorder %s1636_s26, 5 }
  0x2e   : > { %p359_p13 = pnand %p1389_p11, %p358_p12 }
  0x2f   : > { %s365_s8 = sand.u32 (!%p359_p13), 1, %s1612_s20   ;;  %s388_s10 = sand.u32 (!%p359_p13), 1, %s1604_s18  }
  0x30   : > { %362 = sbr.rel (%p359_p13) target bundleno = 970 (0x3ca), region = 74  ;;  %s1390_s11 = sshll.u32 (!%p359_p13), %s365_s8, 8 }
  0x31   : > { %s1391_s12 = sshll.u32 (!%p359_p13), %s388_s10, 8  ;;  %s1832_s15 = scalar_lea.vmem (!%p359_p13), [#allocation4], %s1390_s11 }
  0x32   : > { %s1834_s16 = scalar_lea.vmem (!%p359_p13), [#allocation5], %s1391_s12  ;;  %p1392_p0 = scmp.ne.s32.totalorder (!%p359_p13), %s1624_s23, 0 }
  0x37   : > { %395 = sbr.rel (%p1392_p0) target bundleno = 762 (0x2fa), region = 82  ;;  %p1393_p1 = scmp.ne.s32.totalorder (!%p1392_p0), %s1620_s22, 0 }
  0x3e   : > { %399 = sbr.rel (%p1393_p1) target bundleno = 69 (0x45), region = 86  ;;  %v1638_v32 = vmov (!%p1393_p1), 0.0  }
  0x3f   : > { %400 = vst [vmem:[#allocation2] sm:$0x3] (!%p1393_p1), %v1638_v32 }
  0x45 PF: > { %v417_v33 = vld [vmem:[%s1832_s15 + $0x80] sm:$0xff]  ;;  %v418_v35 = vld [vmem:[%s1832_s15 + $0x88] sm:$0xff]  ;;  %v419_v37 = vld [vmem:[%s1832_s15 + $0x90] sm:$0xff]  ;;  %v530_v17 = vlaneseq  ;;  %vm541_vm0 = vcmask 130112   ;;  %vm548_vm1 = vcmask 195712   ;;  %vm555_vm2 = vcmask 261312  }
  0x46   : > { %v401_v34 = vld [vmem:[%s1832_s15] sm:$0xff]  ;;  %466 = vadd.xlane.f32.xlu1 %v417_v33  ;;  %v402_v36 = vld [vmem:[%s1832_s15 + $0x8] sm:$0xff]  ;;  %v403_v38 = vld [vmem:[%s1832_s15 + $0x10] sm:$0xff]  ;;  %vm562_vm3 = vcmask 326912   ;;  %vm569_vm4 = vcmask 392512   ;;  %vm576_vm5 = vcmask 458112  }
  0x47   : > { %434 = vadd.xlane.f32.xlu0 %v401_v34  ;;  %v420_v39 = vld [vmem:[%s1832_s15 + $0x98] sm:$0xff]  ;;  %v421_v41 = vld [vmem:[%s1832_s15 + $0xa0] sm:$0xff]  ;;  %v422_v43 = vld [vmem:[%s1832_s15 + $0xa8] sm:$0xff]  ;;  %v531_v20 = vand.u32 127, %v530_v17  ;;  %v533_v21 = vshrl.u32 %v530_v17, 7  ;;  %vm583_vm6 = vcmask 523712  }
  0x48   : > { %v404_v40 = vld [vmem:[%s1832_s15 + $0x18] sm:$0xff]  ;;  %v405_v42 = vld [vmem:[%s1832_s15 + $0x20] sm:$0xff]  ;;  %v406_v44 = vld [vmem:[%s1832_s15 + $0x28] sm:$0xff]  ;;  %vm590_vm7 = vcmask 589312   ;;  %vm597_vm8 = vcmask 654912   ;;  %vm604_vm9 = vcmask 720512  }
  0x49   : > { %v423_v45 = vld [vmem:[%s1832_s15 + $0xb0] sm:$0xff]  ;;  %v424_v47 = vld [vmem:[%s1832_s15 + $0xb8] sm:$0xff]  ;;  %v425_v49 = vld [vmem:[%s1832_s15 + $0xc0] sm:$0xff]  ;;  %v536_v22 = vadd.s32 4294967288, %v531_v20  ;;  %v543_v23 = vadd.s32 4294967280, %v531_v20  ;;  %v550_v24 = vadd.s32 4294967272, %v531_v20  ;;  %v534_v28 = vsub.s32 %v531_v20, %v533_v21 }
  0x4a   : > { %468 = vadd.xlane.f32.xlu1 %v418_v35  ;;  %v407_v46 = vld [vmem:[%s1832_s15 + $0x30] sm:$0xff]  ;;  %v408_v48 = vld [vmem:[%s1832_s15 + $0x38] sm:$0xff]  ;;  %v409_v50 = vld [vmem:[%s1832_s15 + $0x40] sm:$0xff]  ;;  %v557_v27 = vadd.s32 4294967264, %v531_v20  ;;  %v564_v29 = vadd.s32 4294967256, %v531_v20  ;;  %v571_v32 = vadd.s32 4294967248, %v531_v20 }
  0x4b   : > { %436 = vadd.xlane.f32.xlu0 %v402_v36  ;;  %v426_v51 = vld [vmem:[%s1832_s15 + $0xc8] sm:$0xff]  ;;  %v427_v53 = vld [vmem:[%s1832_s15 + $0xd0] sm:$0xff]  ;;  %v428_v55 = vld [vmem:[%s1832_s15 + $0xd8] sm:$0xff]  ;;  %v539_v30 = vsub.s32 %v536_v22, %v533_v21  ;;  %v546_v31 = vsub.s32 %v543_v23, %v533_v21  ;;  %v578_v33 = vadd.s32 4294967240, %v531_v20  ;;  %v553_v34 = vsub.s32 %v550_v24, %v533_v21  ;;  %p1394_p2 = scmp.ne.s32.totalorder %s1620_s22, 1 }
  0x4c   : > { %v410_v52 = vld [vmem:[%s1832_s15 + $0x48] sm:$0xff]  ;;  %v411_v54 = vld [vmem:[%s1832_s15 + $0x50] sm:$0xff]  ;;  %v412_v56 = vld [vmem:[%s1832_s15 + $0x58] sm:$0xff]  ;;  %v585_v35 = vadd.s32 4294967232, %v531_v20  ;;  %v592_v36 = vadd.s32 4294967224, %v531_v20  ;;  %vm611_vm10 = vcmask 786112  }
  0x4d   : > { %v429_v57 = vld [vmem:[%s1832_s15 + $0xe0] sm:$0xff]  ;;  %v430_v59 = vld [vmem:[%s1832_s15 + $0xe8] sm:$0xff]  ;;  %v431_v61 = vld [vmem:[%s1832_s15 + $0xf0] sm:$0xff]  ;;  %vm618_vm11 = vcmask 851712   ;;  %vm625_vm12 = vcmask 917312   ;;  %vm632_vm13 = vcmask 982912  }
  0x4e   : > { %470 = vadd.xlane.f32.xlu1 %v419_v37  ;;  %v413_v58 = vld [vmem:[%s1832_s15 + $0x60] sm:$0xff]  ;;  %v414_v60 = vld [vmem:[%s1832_s15 + $0x68] sm:$0xff]  ;;  %v415_v62 = vld [vmem:[%s1832_s15 + $0x70] sm:$0xff]  ;;  %vm639_vm14 = vcmask 1048512   ;;  %vm720_vm15 = vcmask 1041409  }
  0x4f   : > { %438 = vadd.xlane.f32.xlu0 %v403_v38  ;;  %v432_v63 = vld [vmem:[%s1832_s15 + $0xf8] sm:$0xff] }
  0x50   : > { %v416_v0 = vld [vmem:[%s1832_s15 + $0x78] sm:$0xff] }
  0x52   : > { %472 = vadd.xlane.f32.xlu1 %v420_v39  ;;  %v560_v39 = vsub.s32 %v557_v27, %v533_v21 }
  0x53   : > { %440 = vadd.xlane.f32.xlu0 %v404_v40  ;;  %v599_v40 = vadd.s32 4294967216, %v531_v20 }
  0x56   : > { %474 = vadd.xlane.f32.xlu1 %v421_v41  ;;  %v606_v41 = vadd.s32 4294967208, %v531_v20 }
  0x57   : > { %442 = vadd.xlane.f32.xlu0 %v405_v42  ;;  %v567_v42 = vsub.s32 %v564_v29, %v533_v21 }
  0x5a   : > { %476 = vadd.xlane.f32.xlu1 %v422_v43  ;;  %v613_v43 = vadd.s32 4294967200, %v531_v20 }
  0x5b   : > { %444 = vadd.xlane.f32.xlu0 %v406_v44  ;;  %v620_v44 = vadd.s32 4294967192, %v531_v20 }
  0x5e   : > { %478 = vadd.xlane.f32.xlu1 %v423_v45  ;;  %v574_v45 = vsub.s32 %v571_v32, %v533_v21 }
  0x5f   : > { %446 = vadd.xlane.f32.xlu0 %v407_v46  ;;  %v581_v46 = vsub.s32 %v578_v33, %v533_v21 }
  0x62   : > { %480 = vadd.xlane.f32.xlu1 %v424_v47  ;;  %v1914_v47 = vsub.s32 %v585_v35, %v533_v21 }
  0x63   : > { %448 = vadd.xlane.f32.xlu0 %v408_v48  ;;  %v1916_v48 = vsub.s32 %v592_v36, %v533_v21 }
  0x66   : > { %482 = vadd.xlane.f32.xlu1 %v425_v49 }
  0x67   : > { %450 = vadd.xlane.f32.xlu0 %v409_v50 }
  0x6a   : > { %484 = vadd.xlane.f32.xlu1 %v426_v51  ;;  %v627_v51 = vadd.s32 4294967184, %v531_v20 }
  0x6b   : > { %452 = vadd.xlane.f32.xlu0 %v410_v52  ;;  %v634_v52 = vadd.s32 4294967176, %v531_v20 }
  0x6c   : > { %v1940_v17 = vsub.s32 %v627_v51, %v533_v21 }
  0x6d   : > { %v1942_v20 = vsub.s32 %v634_v52, %v533_v21 }
  0x6e   : > { %486 = vadd.xlane.f32.xlu1 %v427_v53 }
  0x6f   : > { %454 = vadd.xlane.f32.xlu0 %v411_v54 }
  0x72   : > { %488 = vadd.xlane.f32.xlu1 %v428_v55  ;;  %v1924_v55 = vsub.s32 %v599_v40, %v533_v21 }
  0x73   : > { %456 = vadd.xlane.f32.xlu0 %v412_v56  ;;  %v1926_v56 = vsub.s32 %v606_v41, %v533_v21 }
  0x76   : > { %490 = vadd.xlane.f32.xlu1 %v429_v57 }
  0x77   : > { %458 = vadd.xlane.f32.xlu0 %v413_v58 }
  0x7a   : > { %492 = vadd.xlane.f32.xlu1 %v430_v59  ;;  %v1930_v59 = vsub.s32 %v613_v43, %v533_v21 }
  0x7b   : > { %460 = vadd.xlane.f32.xlu0 %v414_v60  ;;  %v1932_v60 = vsub.s32 %v620_v44, %v533_v21 }
  0x7e   : > { %494 = vadd.xlane.f32.xlu1 %v431_v61 }
  0x7f   : > { %462 = vadd.xlane.f32.xlu0 %v415_v62 }
  0x82   : > { %496 = vadd.xlane.f32.xlu1 %v432_v63 }
  0x83   : > { %464 = vadd.xlane.f32.xlu0 %v416_v0 }
  0xd3   : > { %v1870_v1 = vpop.xlane.xlu1 %466 }
  0xd4   : > { %v1872_v2 = vpop.xlane.xlu0 %434  ;;  %v644_v61 = vrot.slane %v1870_v1, %v534_v28 }
  0xd5   : > { %v535_v62 = vrot.slane %v1872_v2, %v534_v28 }
  0xd7   : > { %v1874_v3 = vpop.xlane.xlu1 %468 }
  0xd8   : > { %v1876_v4 = vpop.xlane.xlu0 %436  ;;  %v648_v53 = vrot.slane %v1874_v3, %v539_v30 }
  0xd9   : > { %v540_v54 = vrot.slane %v1876_v4, %v539_v30 }
  0xda   : > { %v649_v1 = vsel %vm541_vm0, %v648_v53, %v644_v61 }
  0xdb   : > { %v1878_v5 = vpop.xlane.xlu1 %470  ;;  %v542_v2 = vsel %vm541_vm0, %v540_v54, %v535_v62  ;;  %vm1640_vm0 = vmmov (!%p1394_p2), 0  }
  0xdc   : > { %v1880_v6 = vpop.xlane.xlu0 %438  ;;  %v653_v57 = vrot.slane %v1878_v5, %v546_v31 }
  0xdd   : > { %v547_v58 = vrot.slane %v1880_v6, %v546_v31 }
  0xdf   : > { %v1882_v7 = vpop.xlane.xlu1 %472 }
  0xe0   : > { %v1884_v8 = vpop.xlane.xlu0 %440  ;;  %v658_v63 = vrot.slane %v1882_v7, %v553_v34 }
  0xe1   : > { %v554_v0 = vrot.slane %v1884_v8, %v553_v34 }
  0xe3   : > { %v1886_v9 = vpop.xlane.xlu1 %474 }
  0xe4   : > { %v1888_v10 = vpop.xlane.xlu0 %442  ;;  %v663_v3 = vrot.slane %v1886_v9, %v560_v39  ;;  %v654_v9 = vsel %vm548_vm1, %v653_v57, %v649_v1  ;;  %v1639_v1 = vmov (!%p1394_p2), 0.0|0.0  }
  0xe5   : > { %v561_v4 = vrot.slane %v1888_v10, %v560_v39  ;;  %v549_v10 = vsel %vm548_vm1, %v547_v58, %v542_v2  ;;  %v659_v21 = vsel %vm555_vm2, %v658_v63, %v654_v9  ;;  %v433_v63 = vld [vmem:[#allocation2] sm:$0x3]  ;;  %1462 = vmatprep.subr.bf16.mxu0 (!%p1394_p2), %v1639_v1  ;;  %vm833_vm1 = vcmask (!%p1394_p2), 64512  }
  0xe6   : > { %v556_v24 = vsel %vm555_vm2, %v554_v0, %v549_v10  ;;  %v735_v10 = vld [vmem:[%s2224_s1 + $0x20] sm:$0xff] (!%p1394_p2) }
  0xe7   : > { %v1890_v11 = vpop.xlane.xlu1 %476  ;;  %v563_v28 = vsel %vm562_vm3, %v561_v4, %v556_v24  ;;  %v738_v24 = vld [vmem:[%s2224_s1 + $0x38] sm:$0xff] (!%p1394_p2) }
  0xe8   : > { %v1892_v12 = vpop.xlane.xlu0 %444  ;;  %v668_v7 = vrot.slane %v1890_v11, %v567_v42 }
  0xe9   : > { %v568_v8 = vrot.slane %v1892_v12, %v567_v42  ;;  %v664_v12 = vsel %vm562_vm3, %v663_v3, %v659_v21  ;;  %v737_v21 = vld [vmem:[%s2224_s1 + $0x30] sm:$0xff] (!%p1394_p2) }
  0xea   : > { %v669_v31 = vsel %vm569_vm4, %v668_v7, %v664_v12  ;;  %v734_v7 = vld [vmem:[%s2224_s1 + $0x18] sm:$0xff] (!%p1394_p2)  ;;  %v740_v12 = vld [vmem:[%s2224_s1 + $0x48] sm:$0xff] (!%p1394_p2) }
  0xeb   : > { %v1894_v13 = vpop.xlane.xlu1 %478  ;;  %v570_v32 = vsel %vm569_vm4, %v568_v8, %v563_v28  ;;  %v1641_v8 = vmov (!%p1394_p2), 0.0  }
  0xec   : > { %v1896_v14 = vpop.xlane.xlu0 %446  ;;  %v673_v22 = vrot.slane %v1894_v13, %v574_v45  ;;  %1454 = vmatprep.mubr.msk.f32.mxu0 (!%p1394_p2), %vm1640_vm0, %v1641_v8  ;;  %1457 = vmatprep.subr.mxu1 (!%p1394_p2), %v1641_v8 }
  0xed   : > { %v575_v23 = vrot.slane %v1896_v14, %v574_v45  ;;  %1459 = vmatprep.mubr.msk.f32.mxu1 (!%p1394_p2), %vm1640_vm0, %v1641_v8 }
  0xee   : > { %v674_v33 = vsel %vm576_vm5, %v673_v22, %v669_v31  ;;  %v736_v22 = vld [vmem:[%s2224_s1 + $0x28] sm:$0xff] (!%p1394_p2) }
  0xef   : > { %v1898_v15 = vpop.xlane.xlu1 %480  ;;  %v577_v34 = vsel %vm576_vm5, %v575_v23, %v570_v32  ;;  %v1469_v23 = vpack.c.bf16 (!%p1394_p2), %v736_v22, %v735_v10  ;;  %v744_v31 = vld [vmem:[%s2224_s1 + $0x68] sm:$0xff] (!%p1394_p2) }
  0xf0   : > { %v1900_v16 = vpop.xlane.xlu0 %448  ;;  %v678_v27 = vrot.slane %v1898_v15, %v581_v46 }
  0xf1   : > { %v582_v11 = vrot.slane %v1900_v16, %v581_v46 }
  0xf2   : > { %v679_v35 = vsel %vm583_vm6, %v678_v27, %v674_v33  ;;  %v1472_v27 = vpack.c.bf16 (!%p1394_p2), %v738_v24, %v737_v21 }
  0xf3   : > { %v1902_v18 = vpop.xlane.xlu1 %482  ;;  %v584_v36 = vsel %vm583_vm6, %v582_v11, %v577_v34  ;;  %v739_v11 = vld [vmem:[%s2224_s1 + $0x40] sm:$0xff] (!%p1394_p2) }
  0xf4   : > { %v1904_v19 = vpop.xlane.xlu0 %450  ;;  %v683_v29 = vrot.slane %v1902_v18, %v1914_v47  ;;  %v1475_v28 = vpack.c.bf16 (!%p1394_p2), %v740_v12, %v739_v11 }
  0xf5   : > { %v589_v13 = vrot.slane %v1904_v19, %v1914_v47 }
  0xf6   : > { %v684_v39 = vsel %vm590_vm7, %v683_v29, %v679_v35  ;;  %v741_v29 = vld [vmem:[%s2224_s1 + $0x50] sm:$0xff] (!%p1394_p2)  ;;  %v1395_v35 = vld [vmem:[%s2225_s2] ss:$0 sm:$0xff] (!%p1394_p2) }
  0xf7   : > { %v1906_v25 = vpop.xlane.xlu1 %484  ;;  %v591_v40 = vsel %vm590_vm7, %v589_v13, %v584_v36  ;;  %v742_v13 = vld [vmem:[%s2224_s1 + $0x58] sm:$0xff] (!%p1394_p2) }
  0xf8   : > { %v1908_v26 = vpop.xlane.xlu0 %452  ;;  %v688_v15 = vrot.slane %v1906_v25, %v1916_v48 }
  0xf9   : > { %v596_v16 = vrot.slane %v1908_v26, %v1916_v48 }
  0xfa   : > { %v689_v43 = vsel %vm597_vm8, %v688_v15, %v684_v39  ;;  %v745_v15 = vld [vmem:[%s2224_s1 + $0x70] sm:$0xff] (!%p1394_p2) }
  0xfb   : > { %v1910_v37 = vpop.xlane.xlu1 %486  ;;  %v598_v44 = vsel %vm597_vm8, %v596_v16, %v591_v40  ;;  %v746_v16 = vld [vmem:[%s2224_s1 + $0x78] sm:$0xff] (!%p1394_p2)  ;;  %v1396_v40 = vld [vmem:[%s2227_s4] ss:$0 sm:$0xff] (!%p1394_p2) }
  0xfc   : > { %v1912_v38 = vpop.xlane.xlu0 %454  ;;  %v693_v18 = vrot.slane %v1910_v37, %v1924_v55  ;;  %v1484_v33 = vpack.c.bf16 (!%p1394_p2), %v746_v16, %v745_v15 }
  0xfd   : > { %v603_v19 = vrot.slane %v1912_v38, %v1924_v55 }
  0xfe   : > { %v694_v47 = vsel %vm604_vm9, %v693_v18, %v689_v43 }
  0xff   : > { %v1918_v49 = vpop.xlane.xlu1 %488  ;;  %v605_v48 = vsel %vm604_vm9, %v603_v19, %v598_v44  ;;  %v825_v19 = vld [vmem:[%s2226_s3] sm:$0xff] (!%p1394_p2) }
 0x100   : > { %v1920_v50 = vpop.xlane.xlu0 %456  ;;  %v698_v25 = vrot.slane %v1918_v49, %v1926_v56  ;;  %1458 = vmatpush3.msra.mxu1 (!%p1394_p2), %v825_v19 }
 0x101   : > { %v610_v26 = vrot.slane %v1920_v50, %v1926_v56 }
 0x102   : > { %v699_v51 = vsel %vm611_vm10, %v698_v25, %v694_v47 }
 0x103   : > { %v491_v5 = vpop.xlane.xlu1 %490  ;;  %v612_v52 = vsel %vm611_vm10, %v610_v26, %v605_v48 }
 0x104   : > { %v459_v6 = vpop.xlane.xlu0 %458  ;;  %v703_v41 = vrot.slane %v491_v5, %v1930_v59 }
 0x105   : > { %v617_v37 = vrot.slane %v459_v6, %v1930_v59  ;;  %v731_v6 = vld [vmem:[%s2224_s1] sm:$0xff] (!%p1394_p2) }
 0x106   : > { %v704_v53 = vsel %vm618_vm11, %v703_v41, %v699_v51 }
 0x107   : > { %v493_v14 = vpop.xlane.xlu1 %492  ;;  %v619_v54 = vsel %vm618_vm11, %v617_v37, %v612_v52 }
 0x108   : > { %v461_v30 = vpop.xlane.xlu0 %460  ;;  %v708_v45 = vrot.slane %v493_v14, %v1932_v60  ;;  %v1478_v14 = vpack.c.bf16 (!%p1394_p2), %v742_v13, %v741_v29 }
 0x109   : > { %v624_v46 = vrot.slane %v461_v30, %v1932_v60  ;;  %v743_v30 = vld [vmem:[%s2224_s1 + $0x60] sm:$0xff] (!%p1394_p2) }
 0x10a   : > { %v709_v57 = vsel %vm625_vm12, %v708_v45, %v704_v53  ;;  %v1481_v32 = vpack.c.bf16 (!%p1394_p2), %v744_v31, %v743_v30 }
 0x10b   : > { %v495_v42 = vpop.xlane.xlu1 %494  ;;  %v626_v58 = vsel %vm625_vm12, %v624_v46, %v619_v54 }
 0x10c   : > { %v463_v38 = vpop.xlane.xlu0 %462  ;;  %v713_v49 = vrot.slane %v495_v42, %v1940_v17 }
 0x10d   : > { %v631_v50 = vrot.slane %v463_v38, %v1940_v17  ;;  %v732_v17 = vld [vmem:[%s2224_s1 + $0x8] sm:$0xff] (!%p1394_p2) }
 0x10e   : > { %v714_v61 = vsel %vm632_vm13, %v713_v49, %v709_v57  ;;  %v1463_v2 = vpack.c.bf16 (!%p1394_p2), %v732_v17, %v731_v6 }
 0x10f   : > { %v497_v55 = vpop.xlane.xlu1 %496  ;;  %v633_v62 = vsel %vm632_vm13, %v631_v50, %v626_v58 }
 0x110   : > { %v465_v56 = vpop.xlane.xlu0 %464  ;;  %v718_v59 = vrot.slane %v497_v55, %v1942_v20  ;;  %1464 = vmatpush3.bf16.msra.mxu0 (!%p1394_p2), %v1463_v2 }
 0x111   : > { %v638_v60 = vrot.slane %v465_v56, %v1942_v20  ;;  %728 = sbr.rel (%p1394_p2) target bundleno = 762 (0x2fa), region = 90  ;;  %v733_v20 = vld [vmem:[%s2224_s1 + $0x10] sm:$0xff] (!%p1394_p2)  ;;  %1465 = vmatprep.subr.bf16.mxu0 (!%p1394_p2), %v1639_v1 }
 0x112   : > { %v719_v0 = vsel %vm639_vm14, %v718_v59, %v714_v61  ;;  %v1466_v9 = vpack.c.bf16 (!%p1394_p2), %v734_v7, %v733_v20 }
 0x113   : > { %v640_v3 = vsel %vm639_vm14, %v638_v60, %v633_v62 }
 0x114   : > { %v721_v4 = vsel %vm720_vm15, %v719_v0, %v640_v3  ;;  %1467 = vmatpush3.bf16.msra.mxu0 (!%p1394_p2), %v1466_v9 }
 0x115   : > { %v723_v5 = vadd.f32 %v721_v4, %v433_v63  ;;  %1468 = vmatprep.subr.bf16.mxu0 (!%p1394_p2), %v1639_v1 }
 0x117   : > { %724 = vst [vmem:[#allocation2] sm:$0x3] %v723_v5 }
 0x118   : > { %1470 = vmatpush3.bf16.msra.mxu0 %v1469_v23 }
 0x119   : > { %1471 = vmatprep.subr.bf16.mxu0 %v1639_v1 }
 0x11c   : > { %1473 = vmatpush3.bf16.msra.mxu0 %v1472_v27 }
 0x11d   : > { %1474 = vmatprep.subr.bf16.mxu0 %v1639_v1 }
 0x11e   : > { %v729_v34 = vld [vmem:[#allocation2] sm:$0x3] }
 0x11f   : > { %v730_v18 = vmul.f32 0.00390625, %v729_v34 }
 0x120   : > { %1476 = vmatpush3.bf16.msra.mxu0 %v1475_v28 }
 0x121   : > { %1477 = vmatprep.subr.bf16.mxu0 %v1639_v1 }
 0x124   : > { %1479 = vmatpush3.bf16.msra.mxu0 %v1478_v14 }
 0x125   : > { %1480 = vmatprep.subr.bf16.mxu0 %v1639_v1 }
 0x128   : > { %1482 = vmatpush3.bf16.msra.mxu0 %v1481_v32 }
 0x129   : > { %1483 = vmatprep.subr.bf16.mxu0 %v1639_v1 }
 0x12c   : > { %1485 = vmatpush3.bf16.msra.mxu0 %v1484_v33 }
 0x12f   : > { %1455 = vmatmul.mubr.f32.vlgmr.msra.gmra.mrb[0].mxu0 %v730_v18 }
 0x202   : > { %v820_v36 = vpop.f32.mrb[0].mxu0 }
 0x203   : > { %v821_v25 = vadd.f32 %v1395_v35, %v820_v36  ;;  %v1456_v26 = vpop.f32.mrb[1].mxu0 }
 0x205   : > { %v824_v39 = vmax.f32 %v821_v25, 0.0 }
 0x207   : > { %1460 = vmatmul.mubr.msk.f32.vlgmr.msra.gmra.mrb[0].mxu1 %vm833_vm1, %v824_v39 }
 0x2da   : > { %v903_v41 = vpop.f32.mrb[0].mxu1 }
 0x2db   : > { %v904_v37 = vadd.f32 %v1396_v40, %v903_v41  ;;  %v1461_v42 = vpop.f32.mrb[1].mxu1 }
 0x2dd   : > { %v907_v38 = vsub.f32 0.0, %v904_v37 }
 0x2df   : > { %v908_v43 = vmul.f32 1.442695, %v907_v38 }
 0x2e1   : > { %1562 = vpow2.f32 %v908_v43 }
 0x2eb   : > { %v1563_v44 = vpop.eup %1562 }
 0x2ec   : > { %v910_v45 = vadd.f32 1.0, %v1563_v44 }
 0x2ee   : > { %1564 = vrcp.f32 %v910_v45 }
 0x2f8   : > { %v1565_v46 = vpop.eup %1564 }
 0x2f9   : > { %913 = vst [vmem:[#allocation3] sm:$0x3] %v1565_v46 }
 0x2fa PF: > { %p1398_p3 = scmp.ne.s32.totalorder %s1624_s23, 1 }
 0x2fb   : > { %v951_v47 = vlaneseq (!%p1398_p3)  ;;  %v920_v54 = vld [vmem:[%s1832_s15 + $0x10] sm:$0xff] (!%p1398_p3)  ;;  %v918_v55 = vld [vmem:[%s1832_s15] sm:$0xff] (!%p1398_p3)  ;;  %v921_v60 = vld [vmem:[%s1832_s15 + $0x18] sm:$0xff] (!%p1398_p3) }
 0x2fc   : > { %917 = sbr.rel (%p1398_p3) target bundleno = 949 (0x3b5), region = 94  ;;  %v919_v61 = vld [vmem:[%s1832_s15 + $0x8] sm:$0xff] (!%p1398_p3)  ;;  %v922_v5 = vld [vmem:[%s1832_s15 + $0x20] sm:$0xff] (!%p1398_p3)  ;;  %v925_v2 = vld [vmem:[%s1832_s15 + $0x38] sm:$0xff] (!%p1398_p3) }
 0x2fd   : > { %v952_v48 = vshrl.u32 (!%p1398_p3), %v951_v47, 7  ;;  %v923_v4 = vld [vmem:[%s1832_s15 + $0x28] sm:$0xff] (!%p1398_p3)  ;;  %v924_v7 = vld [vmem:[%s1832_s15 + $0x30] sm:$0xff] (!%p1398_p3)  ;;  %v926_v21 = vld [vmem:[%s1832_s15 + $0x40] sm:$0xff] (!%p1398_p3) }
 0x2fe   : > { %v927_v23 = vld [vmem:[%s1832_s15 + $0x48] sm:$0xff] (!%p1398_p3)  ;;  %v929_v28 = vld [vmem:[%s1832_s15 + $0x58] sm:$0xff] (!%p1398_p3)  ;;  %v928_v29 = vld [vmem:[%s1832_s15 + $0x50] sm:$0xff] (!%p1398_p3) }
 0x2ff   : > { %v953_v50 = vsub.s32 (!%p1398_p3), 0, %v952_v48  ;;  %v1020_v52 = vsub.s32 (!%p1398_p3), 1, %v952_v48  ;;  %v931_v32 = vld [vmem:[%s1832_s15 + $0x68] sm:$0xff] (!%p1398_p3)  ;;  %v930_v15 = vld [vmem:[%s1832_s15 + $0x60] sm:$0xff] (!%p1398_p3)  ;;  %v933_v19 = vld [vmem:[%s1832_s15 + $0x78] sm:$0xff] (!%p1398_p3) }
 0x300   : > { %v950_v49 = vld [vmem:[#allocation3] sm:$0x3] (!%p1398_p3)  ;;  %v932_v35 = vld [vmem:[%s1832_s15 + $0x70] sm:$0xff] (!%p1398_p3)  ;;  %v935_v40 = vld [vmem:[%s1832_s15 + $0x88] sm:$0xff] (!%p1398_p3) }
 0x301   : > { %v954_v51 = vrot.slane (!%p1398_p3), %v950_v49, %v953_v50  ;;  %v1021_v53 = vrot.slane (!%p1398_p3), %v950_v49, %v1020_v52  ;;  %v934_v41 = vld [vmem:[%s1832_s15 + $0x80] sm:$0xff] (!%p1398_p3)  ;;  %v937_v44 = vld [vmem:[%s1832_s15 + $0x98] sm:$0xff] (!%p1398_p3)  ;;  %v936_v45 = vld [vmem:[%s1832_s15 + $0x90] sm:$0xff] (!%p1398_p3) }
 0x302   : > { %v939_v50 = vld [vmem:[%s1832_s15 + $0xa8] sm:$0xff] (!%p1398_p3) }
 0x303   : > { %964 = vbcast.lane.b32.xlu1 %v954_v51, 272  ;;  %956 = vbcast.lane.b32.xlu0 %v954_v51, 256 }
 0x307   : > { %968 = vbcast.lane.b32.xlu1 %v954_v51, 280  ;;  %960 = vbcast.lane.b32.xlu0 %v954_v51, 264 }
 0x30b   : > { %976 = vbcast.lane.b32.xlu1 %v954_v51, 296  ;;  %972 = vbcast.lane.b32.xlu0 %v954_v51, 288 }
 0x30f   : > { %984 = vbcast.lane.b32.xlu1 %v954_v51, 312  ;;  %980 = vbcast.lane.b32.xlu0 %v954_v51, 304 }
 0x313   : > { %992 = vbcast.lane.b32.xlu1 %v954_v51, 328  ;;  %988 = vbcast.lane.b32.xlu0 %v954_v51, 320 }
 0x317   : > { %1000 = vbcast.lane.b32.xlu1 %v954_v51, 344  ;;  %996 = vbcast.lane.b32.xlu0 %v954_v51, 336 }
 0x31b   : > { %1008 = vbcast.lane.b32.xlu1 %v954_v51, 360  ;;  %1004 = vbcast.lane.b32.xlu0 %v954_v51, 352 }
 0x31f   : > { %1016 = vbcast.lane.b32.xlu1 %v954_v51, 376  ;;  %1012 = vbcast.lane.b32.xlu0 %v954_v51, 368  ;;  %v938_v51 = vld [vmem:[%s1832_s15 + $0xa0] sm:$0xff] }
 0x323   : > { %1027 = vbcast.lane.b32.xlu1 %v1021_v53, 264  ;;  %1023 = vbcast.lane.b32.xlu0 %v1021_v53, 256 }
 0x327   : > { %1035 = vbcast.lane.b32.xlu1 %v1021_v53, 280  ;;  %1031 = vbcast.lane.b32.xlu0 %v1021_v53, 272 }
 0x32b   : > { %1043 = vbcast.lane.b32.xlu1 %v1021_v53, 296  ;;  %1039 = vbcast.lane.b32.xlu0 %v1021_v53, 288 }
 0x32f   : > { %1051 = vbcast.lane.b32.xlu1 %v1021_v53, 312  ;;  %1047 = vbcast.lane.b32.xlu0 %v1021_v53, 304 }
 0x333   : > { %1059 = vbcast.lane.b32.xlu1 %v1021_v53, 328  ;;  %1055 = vbcast.lane.b32.xlu0 %v1021_v53, 320 }
 0x337   : > { %1067 = vbcast.lane.b32.xlu1 %v1021_v53, 344  ;;  %1063 = vbcast.lane.b32.xlu0 %v1021_v53, 336 }
 0x33b   : > { %1075 = vbcast.lane.b32.xlu1 %v1021_v53, 360  ;;  %1071 = vbcast.lane.b32.xlu0 %v1021_v53, 352 }
 0x33f   : > { %1083 = vbcast.lane.b32.xlu1 %v1021_v53, 376  ;;  %1079 = vbcast.lane.b32.xlu0 %v1021_v53, 368 }
 0x375   : > { %v965_v56 = vpop.permute.xlu1 %964  ;;  %v957_v57 = vpop.permute.xlu0 %956 }
 0x376   : > { %v1087_v58 = vmul.f32 %v965_v56, %v920_v54  ;;  %v1085_v59 = vmul.f32 %v957_v57, %v918_v55  ;;  %v941_v56 = vld [vmem:[%s1832_s15 + $0xb8] sm:$0xff]  ;;  %v940_v57 = vld [vmem:[%s1832_s15 + $0xb0] sm:$0xff] }
 0x378   : > { %1119 = vst [vmem:[%s1834_s16 + $0x10] sm:$0xff] %v1087_v58  ;;  %1117 = vst [vmem:[%s1834_s16] sm:$0xff] %v1085_v59 }
 0x379   : > { %v969_v62 = vpop.permute.xlu1 %968  ;;  %v961_v63 = vpop.permute.xlu0 %960 }
 0x37a   : > { %v1088_v0 = vmul.f32 %v969_v62, %v921_v60  ;;  %v1086_v3 = vmul.f32 %v961_v63, %v919_v61  ;;  %v943_v62 = vld [vmem:[%s1832_s15 + $0xc8] sm:$0xff]  ;;  %v942_v63 = vld [vmem:[%s1832_s15 + $0xc0] sm:$0xff] }
 0x37c   : > { %1120 = vst [vmem:[%s1834_s16 + $0x18] sm:$0xff] %v1088_v0  ;;  %1118 = vst [vmem:[%s1834_s16 + $0x8] sm:$0xff] %v1086_v3 }
 0x37d   : > { %v977_v6 = vpop.permute.xlu1 %976  ;;  %v973_v17 = vpop.permute.xlu0 %972 }
 0x37e   : > { %v1090_v20 = vmul.f32 %v977_v6, %v923_v4  ;;  %v1089_v1 = vmul.f32 %v973_v17, %v922_v5  ;;  %v945_v6 = vld [vmem:[%s1832_s15 + $0xd8] sm:$0xff]  ;;  %v944_v17 = vld [vmem:[%s1832_s15 + $0xd0] sm:$0xff] }
 0x380   : > { %1122 = vst [vmem:[%s1834_s16 + $0x28] sm:$0xff] %v1090_v20  ;;  %1121 = vst [vmem:[%s1834_s16 + $0x20] sm:$0xff] %v1089_v1 }
 0x381   : > { %v985_v8 = vpop.permute.xlu1 %984  ;;  %v981_v9 = vpop.permute.xlu0 %980 }
 0x382   : > { %v1092_v10 = vmul.f32 %v985_v8, %v925_v2  ;;  %v1091_v22 = vmul.f32 %v981_v9, %v924_v7  ;;  %v947_v8 = vld [vmem:[%s1832_s15 + $0xe8] sm:$0xff]  ;;  %v946_v9 = vld [vmem:[%s1832_s15 + $0xe0] sm:$0xff] }
 0x384   : > { %1124 = vst [vmem:[%s1834_s16 + $0x38] sm:$0xff] %v1092_v10  ;;  %1123 = vst [vmem:[%s1834_s16 + $0x30] sm:$0xff] %v1091_v22 }
 0x385   : > { %v993_v24 = vpop.permute.xlu1 %992  ;;  %v989_v27 = vpop.permute.xlu0 %988 }
 0x386   : > { %v1094_v11 = vmul.f32 %v993_v24, %v927_v23  ;;  %v1093_v12 = vmul.f32 %v989_v27, %v926_v21  ;;  %v949_v24 = vld [vmem:[%s1832_s15 + $0xf8] sm:$0xff]  ;;  %v948_v27 = vld [vmem:[%s1832_s15 + $0xf0] sm:$0xff] }
 0x388   : > { %1126 = vst [vmem:[%s1834_s16 + $0x48] sm:$0xff] %v1094_v11  ;;  %1125 = vst [vmem:[%s1834_s16 + $0x40] sm:$0xff] %v1093_v12 }
 0x389   : > { %v1001_v13 = vpop.permute.xlu1 %1000  ;;  %v997_v14 = vpop.permute.xlu0 %996 }
 0x38a   : > { %v1096_v30 = vmul.f32 %v1001_v13, %v929_v28  ;;  %v1095_v31 = vmul.f32 %v997_v14, %v928_v29 }
 0x38c   : > { %1128 = vst [vmem:[%s1834_s16 + $0x58] sm:$0xff] %v1096_v30  ;;  %1127 = vst [vmem:[%s1834_s16 + $0x50] sm:$0xff] %v1095_v31 }
 0x38d   : > { %v1009_v16 = vpop.permute.xlu1 %1008  ;;  %v1005_v33 = vpop.permute.xlu0 %1004 }
 0x38e   : > { %v1098_v34 = vmul.f32 %v1009_v16, %v931_v32  ;;  %v1097_v18 = vmul.f32 %v1005_v33, %v930_v15 }
 0x390   : > { %1130 = vst [vmem:[%s1834_s16 + $0x68] sm:$0xff] %v1098_v34  ;;  %1129 = vst [vmem:[%s1834_s16 + $0x60] sm:$0xff] %v1097_v18 }
 0x391   : > { %v1017_v36 = vpop.permute.xlu1 %1016  ;;  %v1013_v25 = vpop.permute.xlu0 %1012 }
 0x392   : > { %v1100_v26 = vmul.f32 %v1017_v36, %v933_v19  ;;  %v1099_v39 = vmul.f32 %v1013_v25, %v932_v35 }
 0x394   : > { %1132 = vst [vmem:[%s1834_s16 + $0x78] sm:$0xff] %v1100_v26  ;;  %1131 = vst [vmem:[%s1834_s16 + $0x70] sm:$0xff] %v1099_v39 }
 0x395   : > { %v1028_v37 = vpop.permute.xlu1 %1027  ;;  %v1024_v42 = vpop.permute.xlu0 %1023 }
 0x396   : > { %v1102_v38 = vmul.f32 %v1028_v37, %v935_v40  ;;  %v1101_v43 = vmul.f32 %v1024_v42, %v934_v41 }
 0x398   : > { %1134 = vst [vmem:[%s1834_s16 + $0x88] sm:$0xff] %v1102_v38  ;;  %1133 = vst [vmem:[%s1834_s16 + $0x80] sm:$0xff] %v1101_v43 }
 0x399   : > { %v1036_v46 = vpop.permute.xlu1 %1035  ;;  %v1032_v47 = vpop.permute.xlu0 %1031 }
 0x39a   : > { %v1104_v48 = vmul.f32 %v1036_v46, %v937_v44  ;;  %v1103_v49 = vmul.f32 %v1032_v47, %v936_v45 }
 0x39c   : > { %1136 = vst [vmem:[%s1834_s16 + $0x98] sm:$0xff] %v1104_v48  ;;  %1135 = vst [vmem:[%s1834_s16 + $0x90] sm:$0xff] %v1103_v49 }
 0x39d   : > { %v1044_v52 = vpop.permute.xlu1 %1043  ;;  %v1040_v53 = vpop.permute.xlu0 %1039 }
 0x39e   : > { %v1106_v54 = vmul.f32 %v1044_v52, %v939_v50  ;;  %v1105_v55 = vmul.f32 %v1040_v53, %v938_v51 }
 0x3a0   : > { %1138 = vst [vmem:[%s1834_s16 + $0xa8] sm:$0xff] %v1106_v54  ;;  %1137 = vst [vmem:[%s1834_s16 + $0xa0] sm:$0xff] %v1105_v55 }
 0x3a1   : > { %v1052_v58 = vpop.permute.xlu1 %1051  ;;  %v1048_v59 = vpop.permute.xlu0 %1047 }
 0x3a2   : > { %v1108_v60 = vmul.f32 %v1052_v58, %v941_v56  ;;  %v1107_v61 = vmul.f32 %v1048_v59, %v940_v57 }
 0x3a4   : > { %1140 = vst [vmem:[%s1834_s16 + $0xb8] sm:$0xff] %v1108_v60  ;;  %1139 = vst [vmem:[%s1834_s16 + $0xb0] sm:$0xff] %v1107_v61 }
 0x3a5   : > { %v1060_v0 = vpop.permute.xlu1 %1059  ;;  %v1056_v3 = vpop.permute.xlu0 %1055 }
 0x3a6   : > { %v1110_v4 = vmul.f32 %v1060_v0, %v943_v62  ;;  %v1109_v5 = vmul.f32 %v1056_v3, %v942_v63 }
 0x3a8   : > { %1142 = vst [vmem:[%s1834_s16 + $0xc8] sm:$0xff] %v1110_v4  ;;  %1141 = vst [vmem:[%s1834_s16 + $0xc0] sm:$0xff] %v1109_v5 }
 0x3a9   : > { %v1068_v20 = vpop.permute.xlu1 %1067  ;;  %v1064_v1 = vpop.permute.xlu0 %1063 }
 0x3aa   : > { %v1112_v2 = vmul.f32 %v1068_v20, %v945_v6  ;;  %v1111_v7 = vmul.f32 %v1064_v1, %v944_v17 }
 0x3ac   : > { %1144 = vst [vmem:[%s1834_s16 + $0xd8] sm:$0xff] %v1112_v2  ;;  %1143 = vst [vmem:[%s1834_s16 + $0xd0] sm:$0xff] %v1111_v7 }
 0x3ad   : > { %v1076_v10 = vpop.permute.xlu1 %1075  ;;  %v1072_v22 = vpop.permute.xlu0 %1071 }
 0x3ae   : > { %v1114_v23 = vmul.f32 %v1076_v10, %v947_v8  ;;  %v1113_v21 = vmul.f32 %v1072_v22, %v946_v9 }
 0x3b0   : > { %1146 = vst [vmem:[%s1834_s16 + $0xe8] sm:$0xff] %v1114_v23  ;;  %1145 = vst [vmem:[%s1834_s16 + $0xe0] sm:$0xff] %v1113_v21 }
 0x3b1   : > { %v1084_v11 = vpop.permute.xlu1 %1083  ;;  %v1080_v12 = vpop.permute.xlu0 %1079 }
 0x3b2   : > { %v1116_v28 = vmul.f32 %v1084_v11, %v949_v24  ;;  %v1115_v29 = vmul.f32 %v1080_v12, %v948_v27 }
 0x3b4   : > { %1148 = vst [vmem:[%s1834_s16 + $0xf8] sm:$0xff] %v1116_v28  ;;  %1147 = vst [vmem:[%s1834_s16 + $0xf0] sm:$0xff] %v1115_v29 }
 0x3b5 PF: > { %1155 = sbr.rel (!%p1745_p9) target bundleno = 970 (0x3ca), region = 98  ;;  %v1248_v13 = vld [vmem:[%s1834_s16] sm:$0xff] (%p1745_p9)  ;;  %v1250_v14 = vld [vmem:[%s1834_s16 + $0x8] sm:$0xff] (%p1745_p9)  ;;  %v1252_v30 = vld [vmem:[%s1834_s16 + $0x10] sm:$0xff] (%p1745_p9) }
 0x3b6   : > { %s1156_s15 = smul.u32 (%p1745_p9), %s1620_s22, %s1624_s23  ;;  %v1254_v31 = vld [vmem:[%s1834_s16 + $0x18] sm:$0xff] (%p1745_p9)  ;;  %v1256_v32 = vld [vmem:[%s1834_s16 + $0x20] sm:$0xff] (%p1745_p9)  ;;  %v1258_v15 = vld [vmem:[%s1834_s16 + $0x28] sm:$0xff] (%p1745_p9) }
 0x3b7   : > { %v1260_v16 = vld [vmem:[%s1834_s16 + $0x30] sm:$0xff] (%p1745_p9)  ;;  %v1262_v33 = vld [vmem:[%s1834_s16 + $0x38] sm:$0xff] (%p1745_p9)  ;;  %v1264_v34 = vld [vmem:[%s1834_s16 + $0x40] sm:$0xff] (%p1745_p9) }
 0x3b8   : > { %s1400_s13 = sshll.u32 (%p1745_p9), %s1156_s15, 3  ;;  %v1266_v18 = vld [vmem:[%s1834_s16 + $0x48] sm:$0xff] (%p1745_p9)  ;;  %v1268_v19 = vld [vmem:[%s1834_s16 + $0x50] sm:$0xff] (%p1745_p9)  ;;  %v1270_v35 = vld [vmem:[%s1834_s16 + $0x58] sm:$0xff] (%p1745_p9) }
 0x3b9   : > { %s2139_s8 = scalar_lea.vmem (%p1745_p9), %s2228_s5, %s1400_s13  ;;  %v1272_v36 = vld [vmem:[%s1834_s16 + $0x60] sm:$0xff] (%p1745_p9)  ;;  %v1274_v25 = vld [vmem:[%s1834_s16 + $0x68] sm:$0xff] (%p1745_p9)  ;;  %v1276_v26 = vld [vmem:[%s1834_s16 + $0x70] sm:$0xff] (%p1745_p9) }
 0x3ba   : > { %1249 = vst [vmem:[%s2139_s8] sm:$0xff] (%p1745_p9), %v1248_v13  ;;  %1251 = vst [vmem:[%s2139_s8 + $0x10] sm:$0xff] (%p1745_p9), %v1250_v14  ;;  %v1278_v39 = vld [vmem:[%s1834_s16 + $0x78] sm:$0xff] (%p1745_p9)  ;;  %v1280_v40 = vld [vmem:[%s1834_s16 + $0x80] sm:$0xff] (%p1745_p9) }
 0x3bb   : > { %1253 = vst [vmem:[%s2139_s8 + $0x20] sm:$0xff] (%p1745_p9), %v1252_v30  ;;  %1255 = vst [vmem:[%s2139_s8 + $0x30] sm:$0xff] (%p1745_p9), %v1254_v31  ;;  %v1282_v41 = vld [vmem:[%s1834_s16 + $0x88] sm:$0xff] (%p1745_p9)  ;;  %v1284_v37 = vld [vmem:[%s1834_s16 + $0x90] sm:$0xff] (%p1745_p9) }
 0x3bc   : > { %1257 = vst [vmem:[%s2139_s8 + $0x40] sm:$0xff] %v1256_v32  ;;  %1259 = vst [vmem:[%s2139_s8 + $0x50] sm:$0xff] %v1258_v15  ;;  %v1286_v42 = vld [vmem:[%s1834_s16 + $0x98] sm:$0xff]  ;;  %v1288_v38 = vld [vmem:[%s1834_s16 + $0xa0] sm:$0xff] }
 0x3bd   : > { %1261 = vst [vmem:[%s2139_s8 + $0x60] sm:$0xff] %v1260_v16  ;;  %1263 = vst [vmem:[%s2139_s8 + $0x70] sm:$0xff] %v1262_v33  ;;  %v1290_v43 = vld [vmem:[%s1834_s16 + $0xa8] sm:$0xff]  ;;  %v1292_v44 = vld [vmem:[%s1834_s16 + $0xb0] sm:$0xff] }
 0x3be   : > { %1265 = vst [vmem:[%s2139_s8 + $0x80] sm:$0xff] %v1264_v34  ;;  %1267 = vst [vmem:[%s2139_s8 + $0x90] sm:$0xff] %v1266_v18  ;;  %v1294_v45 = vld [vmem:[%s1834_s16 + $0xb8] sm:$0xff]  ;;  %v1296_v46 = vld [vmem:[%s1834_s16 + $0xc0] sm:$0xff] }
 0x3bf   : > { %1269 = vst [vmem:[%s2139_s8 + $0xa0] sm:$0xff] %v1268_v19  ;;  %1271 = vst [vmem:[%s2139_s8 + $0xb0] sm:$0xff] %v1270_v35  ;;  %v1298_v47 = vld [vmem:[%s1834_s16 + $0xc8] sm:$0xff]  ;;  %v1300_v48 = vld [vmem:[%s1834_s16 + $0xd0] sm:$0xff] }
 0x3c0   : > { %1273 = vst [vmem:[%s2139_s8 + $0xc0] sm:$0xff] %v1272_v36  ;;  %1275 = vst [vmem:[%s2139_s8 + $0xd0] sm:$0xff] %v1274_v25  ;;  %v1302_v49 = vld [vmem:[%s1834_s16 + $0xd8] sm:$0xff]  ;;  %v1304_v50 = vld [vmem:[%s1834_s16 + $0xe0] sm:$0xff] }
 0x3c1   : > { %1277 = vst [vmem:[%s2139_s8 + $0xe0] sm:$0xff] %v1276_v26  ;;  %1279 = vst [vmem:[%s2139_s8 + $0xf0] sm:$0xff] %v1278_v39  ;;  %v1306_v51 = vld [vmem:[%s1834_s16 + $0xe8] sm:$0xff]  ;;  %v1308_v52 = vld [vmem:[%s1834_s16 + $0xf0] sm:$0xff] }
 0x3c2   : > { %1281 = vst [vmem:[%s2139_s8 + $0x100] sm:$0xff] %v1280_v40  ;;  %1283 = vst [vmem:[%s2139_s8 + $0x110] sm:$0xff] %v1282_v41  ;;  %v1310_v53 = vld [vmem:[%s1834_s16 + $0xf8] sm:$0xff] }
 0x3c3   : > { %1285 = vst [vmem:[%s2139_s8 + $0x120] sm:$0xff] %v1284_v37  ;;  %1287 = vst [vmem:[%s2139_s8 + $0x130] sm:$0xff] %v1286_v42 }
 0x3c4   : > { %1289 = vst [vmem:[%s2139_s8 + $0x140] sm:$0xff] %v1288_v38  ;;  %1291 = vst [vmem:[%s2139_s8 + $0x150] sm:$0xff] %v1290_v43 }
 0x3c5   : > { %1293 = vst [vmem:[%s2139_s8 + $0x160] sm:$0xff] %v1292_v44  ;;  %1295 = vst [vmem:[%s2139_s8 + $0x170] sm:$0xff] %v1294_v45 }
 0x3c6   : > { %1297 = vst [vmem:[%s2139_s8 + $0x180] sm:$0xff] %v1296_v46  ;;  %1299 = vst [vmem:[%s2139_s8 + $0x190] sm:$0xff] %v1298_v47 }
 0x3c7   : > { %1301 = vst [vmem:[%s2139_s8 + $0x1a0] sm:$0xff] %v1300_v48  ;;  %1303 = vst [vmem:[%s2139_s8 + $0x1b0] sm:$0xff] %v1302_v49 }
 0x3c8   : > { %1305 = vst [vmem:[%s2139_s8 + $0x1c0] sm:$0xff] %v1304_v50  ;;  %1307 = vst [vmem:[%s2139_s8 + $0x1d0] sm:$0xff] %v1306_v51 }
 0x3c9   : > { %1309 = vst [vmem:[%s2139_s8 + $0x1e0] sm:$0xff] %v1308_v52  ;;  %1311 = vst [vmem:[%s2139_s8 + $0x1f0] sm:$0xff] %v1310_v53 }
 0x3ca PF: > { %s15_s26 = sadd.s32 1, %s1636_s26   ;;  %s2231_s18 = smov %s1608_s19 }
 0x3cb   : > { %p12_p4 = scmp.ge.s32.totalorder %s15_s26, 6   ;;  %s2232_s19 = smov %s1750_s14 }
 0x3cc   : > { %s2233_s20 = smov %s1616_s21  ;;  %s2234_s21 = smov %s1738_s9 }
 0x3cd   : > { %s2235_s22 = smov %s1628_s24  ;;  %s2236_s23 = smov %s1632_s25 }
 0x3ce   : > { %s2237_s24 = smov %s2240_s28  ;;  %s2238_s25 = smov %s2244_s29 }
 0x3cf   :  { %14 = sbr.rel (!%p12_p4) target bundleno = 5 (0x5), region = 167 }

</bundles_post_ra>
